<compile_context>
chip_gen: v6e
topology: v6e:2x2x1
jax: 0.10.0
libtpu: 0.0.40
codegen_flags: <defaults>
</compile_context>

<pallas_src>
import jax
import jax.numpy as jnp
from jax.experimental import pallas as pl
from jax.experimental.pallas import tpu as pltpu


def projection_head_kernel(x_ref, w_ref, b_ref, o_ref):
    # x_ref: (TB, D_in), w_ref: (D_in, D_out), b_ref: (1, D_out), o_ref: (TB, D_out)
    # Native-dtype operands straight to the MXU; accumulate in f32.
    y = jnp.dot(x_ref[...], w_ref[...], preferred_element_type=jnp.float32)
    y = y + b_ref[...].astype(jnp.float32)

    # F.normalize(y, dim=1): y / max(||y||_2, eps), eps = 1e-12 (PyTorch default).
    # Clamp the squared norm at eps^2 (equivalent, both nonnegative) and use
    # rsqrt so the work lands on the EUP instead of VPU sqrt + divide.
    eps = 1e-12
    sq = jnp.sum(y * y, axis=1, keepdims=True)
    inv_norm = jax.lax.rsqrt(jnp.maximum(sq, eps * eps))
    o_ref[...] = (y * inv_norm).astype(o_ref.dtype)


def _round_up(x, m):
    return ((x + m - 1) // m) * m


def _default_block_b():
    """Per-generation batch tile: v5* HBM (~0.8 TB/s) hides per-step overhead
    at ~2048 rows; v6e/v7x (1.4-3.2 TB/s) want >= 4096 to stay on the roofline."""
    try:
        kind = jax.devices()[0].device_kind.lower()
    except Exception:
        return 4096
    if "v5" in kind:
        return 2048
    return 4096


def projection_head(x, w, b, *, block_b=None):
    """x: (B, D_in), w: (D_in, D_out), b: (D_out,) -> (B, D_out) L2-normalized rows."""
    B, D_in = x.shape
    D_out = w.shape[1]
    b2d = b.reshape(1, D_out)

    if block_b is None:
        block_b = _default_block_b()

    # --- choose the batch tile TB ---
    if B <= block_b:
        if B >= 16:
            # Whole batch would be one tile; split it so the grid has >= 2
            # balanced steps for v7x megacore (no effect on v5e/v6e).
            TB = _round_up(pl.cdiv(B, 2), 8)
        else:
            # Tiny batch: single tile equal to the full dim (valid BlockSpec).
            TB = B
    else:
        TB = block_b

    # Pad the batch so TB divides it -> unmasked, lane-dense output stores and
    # full-rectangle x DMAs on every step.  Pad rows are zeros (normalize of
    # the pure-bias row is finite) and are sliced off below.
    B_pad = _round_up(B, TB)
    x_in = x if B_pad == B else jnp.pad(x, ((0, B_pad - B), (0, 0)))
    grid = (B_pad // TB,)

    x_item = jnp.dtype(x.dtype).itemsize
    w_item = jnp.dtype(w.dtype).itemsize
    b_item = jnp.dtype(b.dtype).itemsize

    # Scoped-VMEM budget: double-buffered x/out tiles, (resident but
    # double-allocated) weight/bias, f32 intermediates (y, y*y, normalized),
    # plus headroom.  Capped well below every generation's physical VMEM
    # (64 MiB on v7x).
    vmem_bytes = int(
        2 * TB * D_in * x_item          # x tiles (double-buffered)
        + 2 * TB * D_out * x_item       # out tiles (double-buffered)
        + 2 * D_in * D_out * w_item     # weight
        + 2 * D_out * b_item            # bias
        + 3 * TB * D_out * 4            # f32 intermediates in the epilogue
        + (2 << 20)                     # headroom
    )
    vmem_bytes = max(min(vmem_bytes, 48 << 20), 1 << 20)

    cost = pl.CostEstimate(
        flops=2 * B_pad * D_in * D_out,
        transcendentals=B_pad,  # one rsqrt per row
        bytes_accessed=(
            B_pad * D_in * x_item
            + D_in * D_out * w_item
            + D_out * b_item
            + B_pad * D_out * x_item
        ),
    )

    out = pl.pallas_call(
        projection_head_kernel,
        out_shape=jax.ShapeDtypeStruct((B_pad, D_out), x.dtype),
        grid_spec=pltpu.PrefetchScalarGridSpec(
            num_scalar_prefetch=0,
            grid=grid,
            in_specs=[
                # x tiles stream along the batch axis.
                pl.BlockSpec((TB, D_in), lambda i: (i, 0)),
                # Weight and bias are resident: constant block index.
                pl.BlockSpec((D_in, D_out), lambda i: (0, 0)),
                pl.BlockSpec((1, D_out), lambda i: (0, 0)),
            ],
            out_specs=pl.BlockSpec((TB, D_out), lambda i: (i, 0)),
        ),
        compiler_params=pltpu.CompilerParams(
            # Rows are independent -> shard batch tiles across TCs on v7x.
            dimension_semantics=("parallel",),
            vmem_limit_bytes=vmem_bytes,
        ),
        cost_estimate=cost,
    )(x_in, w, b2d)

    if B_pad != B:
        out = out[:B]
    return out


def reference(x, w, b):
    y = x @ w + b
    norm = jnp.sqrt(jnp.sum(y * y, axis=1, keepdims=True))
    return y / jnp.maximum(norm, 1e-12)


if __name__ == "__main__":
    # Small shapes consistent with the module: batch=8, input_dim=32, output_dim=128.
    B, D_in, D_out = 8, 32, 128

    key = jax.random.PRNGKey(0)
    kx, kw, kb = jax.random.split(key, 3)

    x = jax.random.normal(kx, (B, D_in), dtype=jnp.float32)

    # Deterministic parameter init mimicking nn.Linear: U(-1/sqrt(D_in), 1/sqrt(D_in)).
    bound = 1.0 / (D_in ** 0.5)
    w = jax.random.uniform(kw, (D_in, D_out), minval=-bound, maxval=bound,
                           dtype=jnp.float32)
    b = jax.random.uniform(kb, (D_out,), minval=-bound, maxval=bound,
                           dtype=jnp.float32)

    out = projection_head(x, w, b)
    out = jax.block_until_ready(out)

    ref = reference(x, w, b)
    assert out.shape == (B, D_out)
    assert jnp.allclose(out, ref, atol=1e-5, rtol=1e-5), "mismatch vs reference"

    # Also exercise a padded / multi-tile / megacore-split path at a moderate size.
    B2 = 1000
    x2 = jax.random.normal(kx, (B2, D_in), dtype=jnp.float32)
    out2 = jax.block_until_ready(projection_head(x2, w, b))
    ref2 = reference(x2, w, b)
    assert out2.shape == (B2, D_out)
    assert jnp.allclose(out2, ref2, atol=1e-5, rtol=1e-5), "mismatch vs reference (large)"

    print("KERNEL_OK")
</pallas_src>

<mosaic_0001>
module attributes {stable_mosaic.version = 11 : i64} {
  func.func @projection_head_kernel(%arg0: i32, %arg1: memref<8x32xf32, #tpu.memory_space<vmem>>, %arg2: memref<32x128xf32, #tpu.memory_space<vmem>>, %arg3: memref<1x128xf32, #tpu.memory_space<vmem>>, %arg4: memref<8x128xf32, #tpu.memory_space<vmem>>) attributes {dimension_semantics = [#tpu.dimension_semantics<parallel>], iteration_bounds = array<i64: 1>, scalar_prefetch = 0 : i64, scratch_operands = 0 : i64, tpu.core_type = #tpu.core_type<tc>, window_params = [{transform_indices = @transform_0, window_bounds = array<i64: 8, 32>}, {pipeline_mode = #tpu.pipeline_mode<synchronous>, transform_indices = @transform_1, window_bounds = array<i64: 32, 128>}, {pipeline_mode = #tpu.pipeline_mode<synchronous>, transform_indices = @transform_2, window_bounds = array<i64: 1, 128>}, {transform_indices = @transform_3, window_bounds = array<i64: 8, 128>}]} {
    %c0 = arith.constant 0 : index
    %c0_0 = arith.constant 0 : index
    %0 = vector.load %arg1[%c0, %c0_0] : memref<8x32xf32, #tpu.memory_space<vmem>>, vector<8x32xf32>
    %c0_1 = arith.constant 0 : index
    %c0_2 = arith.constant 0 : index
    %1 = vector.load %arg2[%c0_1, %c0_2] : memref<32x128xf32, #tpu.memory_space<vmem>>, vector<32x128xf32>
    %cst = arith.constant dense<0.000000e+00> : vector<8x128xf32>
    %2 = tpu.matmul %0, %1, %cst {dimension_numbers = #tpu.dot_dimension_numbers<[1], [0], [0], [1], [0, 0, 1, 1], [], []>} : vector<8x32xf32>, vector<32x128xf32>, vector<8x128xf32> -> vector<8x128xf32>
    %c0_3 = arith.constant 0 : index
    %c0_4 = arith.constant 0 : index
    %3 = vector.load %arg3[%c0_3, %c0_4] : memref<1x128xf32, #tpu.memory_space<vmem>>, vector<1x128xf32>
    %4 = vector.broadcast %3 : vector<1x128xf32> to vector<8x128xf32>
    %5 = arith.addf %2, %4 : vector<8x128xf32>
    %6 = arith.mulf %5, %5 : vector<8x128xf32>
    %cst_5 = arith.constant dense<0.000000e+00> : vector<8xf32>
    %7 = vector.multi_reduction <add>, %6, %cst_5 [1] : vector<8x128xf32> to vector<8xf32>
    %8 = vector.shape_cast %7 : vector<8xf32> to vector<8x1xf32>
    %cst_6 = arith.constant 1.000000e-24 : f32
    %9 = vector.broadcast %cst_6 : f32 to vector<8x1xf32>
    %10 = arith.maximumf %8, %9 : vector<8x1xf32>
    %11 = math.rsqrt %10 : vector<8x1xf32>
    %12 = vector.broadcast %11 : vector<8x1xf32> to vector<8x128xf32>
    %13 = arith.mulf %5, %12 : vector<8x128xf32>
    %c0_7 = arith.constant 0 : index
    %c0_8 = arith.constant 0 : index
    %14 = vector.load %arg4[%c0_7, %c0_8] : memref<8x128xf32, #tpu.memory_space<vmem>>, vector<8x128xf32>
    tpu.vector_store %arg4[%c0_7, %c0_8], %13 {strides = array<i32>} : memref<8x128xf32, #tpu.memory_space<vmem>>, vector<8x128xf32>,
    return
  }
  func.func @transform_0(%arg0: i32) -> (i32, i32) {
    %c0_i32 = arith.constant 0 : i32
    %c0_i32_0 = arith.constant 0 : i32
    return %arg0, %c0_i32 : i32, i32
  }
  func.func @transform_1(%arg0: i32) -> (i32, i32) {
    %c0_i32 = arith.constant 0 : i32
    %c0_i32_0 = arith.constant 0 : i32
    %c0_i32_1 = arith.constant 0 : i32
    return %c0_i32, %c0_i32_0 : i32, i32
  }
  func.func @transform_2(%arg0: i32) -> (i32, i32) {
    %c0_i32 = arith.constant 0 : i32
    %c0_i32_0 = arith.constant 0 : i32
    %c0_i32_1 = arith.constant 0 : i32
    return %c0_i32, %c0_i32_0 : i32, i32
  }
  func.func @transform_3(%arg0: i32) -> (i32, i32) {
    %c0_i32 = arith.constant 0 : i32
    %c0_i32_0 = arith.constant 0 : i32
    return %arg0, %c0_i32 : i32, i32
  }
}

</mosaic_0001>

<bundles_post_ra>
// kernel: tpu_custom_call.1
= control target key start
LH: loop header
LB: loop body
LE: loop exit
PB: predicated region body
PF: predicated region fallthrough
CT: control target
= control target key end

     0   :  { %8 = vsyncpa [#allocation3], 0  ;;  %s282_s0 = inlined_call_operand.hbm [shape: f32[8,32], index: 0, kind: input, shape index: {}]   ;;  %s283_s1 = inlined_call_operand.hbm [shape: f32[32,128], index: 1, kind: input, shape index: {}]   ;;  %s284_s2 = inlined_call_operand.vmem [shape: f32[1,128], index: 2, kind: input, shape index: {}]   ;;  %s285_s3 = inlined_call_operand.hbm [shape: f32[8,128], index: 3, kind: output, shape index: {}]  }
   0x1   :  { %9 = vsyncpa [#allocation6], 0 }
   0x2   :  { %10 = vsyncpa [#allocation4], 0  ;;  %s243_s12 = smov [#allocation2]   ;;  %s244_s14 = smov [#allocation5]  }
   0x3   :  { %s17_s13 = sshll.u32 %s243_s12, 4  ;;  %s26_s15 = sshll.u32 %s244_s14, 4  ;;  %s18_s13 = int_to_ptr.vmem [resolvable:$true] %s17_s13  ;;  %s27_s15 = int_to_ptr.vmem [resolvable:$true] %s26_s15 }
   0x4   :  { %s185_s16 = scalar_lea.vmem %s18_s13, 128  ;;  %p190_p1 = scmp.lt.s32.totalorder %s18_s13, %s18_s13 }
   0x5   :  { %p186_p0 = scmp.ne.s32.totalorder %s18_s13, %s185_s16  ;;  %p191_p2 = scmp.lt.s32.totalorder %s185_s16, %s185_s16 }
   0x7   :  { %p192_p3 = por %p191_p2, %p190_p1 }
   0x9   :  { %p193_p4 = pnand %p192_p3, %p186_p0 }
   0xb   :  { %196 = shalt.err (!%p193_p4)
}
   0xc   :  { %20 = dma.hbm_to_vmem [thread:$0]  %s282_s0, 128, %s18_s13, [#allocation3]  }
   0xd   :  { %s205_s19 = scalar_lea.vmem %s27_s15, 512  ;;  %p210_p6 = scmp.lt.s32.totalorder %s27_s15, %s27_s15 }
   0xe   :  { %p206_p5 = scmp.ne.s32.totalorder %s27_s15, %s205_s19  ;;  %p211_p7 = scmp.lt.s32.totalorder %s205_s19, %s205_s19 }
  0x10   :  { %p212_p8 = por %p211_p7, %p210_p6 }
  0x12   :  { %p213_p9 = pnand %p212_p8, %p206_p5 }
  0x14   :  { %216 = shalt.err (!%p213_p9)
}
  0x15   :  { %s245_s20 = smov 128   ;;  %s246_s21 = smov 8  }
  0x16   :  { %32 = dma.hbm_to_vmem [thread:$0]  %s283_s1, 512, %s27_s15, [#allocation6], %s245_s20, %s245_s20, %s246_s21  }
  0x17   :  { %237 = dma.done.wait [#allocation3], 128  }
  0x18   :  { %238 = vsyncadd [#allocation3], 4294967168 }
  0x19   :  { %239 = dma.done.wait [#allocation6], 512  }
  0x1a   :  { %240 = vsyncadd [#allocation6], 4294966784  ;;  %v247_v0 = vmov 0.0   ;;  %vm248_vm0 = vmmov 0   ;;  %v45_v1 = vld [vmem:[#allocation5 + $0x18] sm:$0xff]  ;;  %v44_v2 = vld [vmem:[#allocation5 + $0x10] sm:$0xff] }
  0x1b   :  { %157 = vmatprep.subr.mxu0 %v247_v0  ;;  %165 = vmatprep.mubr.msk.f32.mxu0 %vm248_vm0, %v247_v0  ;;  %v43_v3 = vld [vmem:[#allocation5 + $0x8] sm:$0xff]  ;;  %v42_v4 = vld [vmem:[#allocation5] sm:$0xff]  ;;  %v41_v5 = vld [vmem:[#allocation2] sm:$0xff]  ;;  %vm53_vm1 = vcmask 261120   ;;  %s249_s24 = smov [#allocation7]  }
  0x1c   :  { %158 = vmatpush3.msra.mxu0 %v45_v1  ;;  %v150_v6 = vld [vmem:[%s284_s2] ss:$0 sm:$0xff]  ;;  %s140_s25 = sshll.u32 %s249_s24, 4  ;;  %s141_s25 = int_to_ptr.vmem [resolvable:$true] %s140_s25 }
  0x1d   :  { %159 = vmatprep.subr.mxu0 %v247_v0  ;;  %s217_s26 = scalar_lea.vmem %s141_s25, 128  ;;  %p222_p11 = scmp.lt.s32.totalorder %s141_s25, %s141_s25 }
  0x1e   :  { %160 = vmatpush3.msra.mxu0 %v44_v2  ;;  %p218_p10 = scmp.ne.s32.totalorder %s141_s25, %s217_s26  ;;  %p223_p12 = scmp.lt.s32.totalorder %s217_s26, %s217_s26 }
  0x1f   :  { %161 = vmatprep.subr.mxu0 %v247_v0 }
  0x20   :  { %162 = vmatpush3.msra.mxu0 %v43_v3  ;;  %p224_p13 = por %p223_p12, %p222_p11 }
  0x21   :  { %163 = vmatprep.subr.mxu0 %v247_v0 }
  0x22   :  { %164 = vmatpush3.msra.mxu0 %v42_v4  ;;  %p225_p0 = pnand %p224_p13, %p218_p10 }
  0x23   :  { %166 = vmatmul.mubr.msk.f32.vlgmr.msra.gmra.mxu0 %vm53_vm1, %v41_v5 }
  0xe3   :  { %v123_v7 = vpop.f32.mrf.mxu0 }
  0xe4   :  { %v124_v8 = vadd.f32 %v150_v6, %v123_v7 }
  0xe5   :  { %v167_v9 = vpop.f32.mrf.mxu0 }
  0xe6   :  { %v127_v10 = vmul.f32 %v124_v8, %v124_v8 }
  0xe8   :  { %128 = vadd.xlane.f32.xlu0 %v127_v10 }
 0x171   :  { %v129_v11 = vpop.xlane.xlu0 %128 }
 0x172   :  { %v130_v12 = vmax.f32 %v129_v11, 1e-24 }
 0x174   :  { %175 = vrsqrt.f32 %v130_v12 }
 0x181   :  { %v176_v13 = vpop.eup %175 }
 0x182   :  { %v132_v14 = vmul.f32 %v176_v13, %v124_v8 }
 0x184   :  { %133 = vst [vmem:[#allocation7] sm:$0xff] %v132_v14 }
 0x185   :  { %228 = shalt.err (!%p225_p0)
}
 0x186   :  { %143 = dma.vmem_to_hbm [thread:$0]  %s141_s25, 128, %s285_s3, [#allocation4]  }
 0x187   :  { %241 = dma.done.wait [#allocation4], 128  }
 0x188   :  { %242 = vsyncadd [#allocation4], 4294967168 }
 0x189   :  { %147 = vsyncpa [#allocation3], 1 }
 0x18a   :  { %148 = vsyncpa [#allocation6], 1 }
 0x18b   :  { %149 = vsyncpa [#allocation4], 1 }

</bundles_post_ra>
